<compile_context>
chip_gen: v7x
topology: tpu7x:2x2x1
jax: 0.10.0
libtpu: 0.0.40
codegen_flags: <defaults>
</compile_context>

<pallas_src>
import functools

import jax
import jax.numpy as jnp
from jax.experimental import pallas as pl
from jax.experimental.pallas import tpu as pltpu


# --------------------------------------------------------------------------
# Kernels
# --------------------------------------------------------------------------
def _dilated_conv_matmul_kernel(x_ref, w_ref, b_ref, o_ref, stack_ref, *,
                                ksize, dil, pad, c_in):
    """Grid step: fused dilated conv over a (block_batch, C_in, T_pad) tile.

    Builds a (K*C_in, T_pad) slab of rolled taps in VMEM scratch and does a
    single (C_out, K*C_in) x (K*C_in, T_pad) MXU contraction per sample.
    Correctness of the mask-free rolls relies on the wrapper guaranteeing
    >= pad trailing zero lanes (t_pad >= T + pad).
    """
    bblk, _, tdim = x_ref.shape
    w2 = w_ref[...]                 # (C_out, K*C_in), f32 or bf16
    bias = b_ref[...]               # (C_out, 1), f32

    def body(b, carry):
        xb = x_ref[b]               # (C_in, T_pad)
        for k in range(ksize):      # static unroll over taps (XLU rolls)
            off = k * dil - pad
            if off == 0:
                xs = xb
            else:
                xs = pltpu.roll(xb, shift=(-off) % tdim, axis=1)
            stack_ref[k * c_in:(k + 1) * c_in, :] = xs.astype(stack_ref.dtype)
        acc = jnp.dot(w2, stack_ref[...],
                      preferred_element_type=jnp.float32)        # one MXU dot
        o_ref[b] = (acc + bias).astype(o_ref.dtype)
        return carry

    jax.lax.fori_loop(0, bblk, body, 0)


def _dilated_conv_depthwise_kernel(x_ref, w_ref, b_ref, o_ref, *,
                                   ksize, dil, pad):
    """Depthwise (groups == C_in == C_out) path: VPU broadcast-multiply."""
    bblk, _, tdim = x_ref.shape
    w = w_ref[...]                  # (K, C, 1)
    bias = b_ref[...]               # (C, 1)

    def body(b, carry):
        xb = x_ref[b]               # (C, T_pad)
        acc = jnp.zeros(xb.shape, jnp.float32)
        for k in range(ksize):
            off = k * dil - pad
            if off == 0:
                xs = xb
            else:
                xs = pltpu.roll(xb, shift=(-off) % tdim, axis=1)
            acc = acc + w[k] * xs
        o_ref[b] = (acc + bias).astype(o_ref.dtype)
        return carry

    jax.lax.fori_loop(0, bblk, body, 0)


# --------------------------------------------------------------------------
# Wrapper
# --------------------------------------------------------------------------
def _chip_info():
    """Best-effort chip query (never raises)."""
    num_tc = 1
    vmem_phys = 128 * 1024 * 1024
    try:
        kind = jax.devices()[0].device_kind.lower()
    except Exception:
        kind = ""
    if "v7" in kind:                 # v7x: 2 TensorCores, 64 MiB VMEM per TC
        num_tc = 2
        vmem_phys = 64 * 1024 * 1024
    return num_tc, vmem_phys


def dilated_conv(x, weight, bias, *, kSize, stride=1, d=1, groups=1,
                 block_batch=None, use_bf16_matmul=None):
    """Pallas TPU forward of nn.Conv1d(nIn, nOut, kSize, stride, dilation=d,
    padding=(kSize-1)//2*d, groups=groups).  x: (B, nIn, T) float32."""
    B, c_in, T = x.shape
    c_out = weight.shape[0]
    if kSize % 2 != 1:
        # TODO(synk): even kernel sizes change output length under PyTorch's
        # padding=(kSize-1)//2*d convention; not implemented here.
        raise NotImplementedError("dilated_conv requires an odd kSize")
    assert c_in % groups == 0 and c_out % groups == 0
    assert weight.shape == (c_out, c_in // groups, kSize)
    assert bias.shape == (c_out,)
    pad = (kSize - 1) // 2 * d

    depthwise = (groups == c_in == c_out)
    if use_bf16_matmul is None:
        # Auto: only once the fused contraction is deep enough for the MXU's
        # bf16 path to matter; keeps small configs bit-tight at f32.
        use_bf16_matmul = (not depthwise) and (kSize * c_in >= 128)

    # ---- weight prep (host side) ------------------------------------------
    if depthwise:
        w_arr = jnp.transpose(weight, (2, 0, 1)).astype(jnp.float32)  # (K,C,1)
    else:
        if groups == 1:
            dense = weight                                    # (Cout, Cin, K)
        else:
            # Block-diagonal expansion (fine for small `groups`).
            cin_g, cout_g = c_in // groups, c_out // groups
            dense = jnp.zeros((c_out, c_in, kSize), weight.dtype)
            for g in range(groups):
                dense = dense.at[g * cout_g:(g + 1) * cout_g,
                                 g * cin_g:(g + 1) * cin_g, :].set(
                    weight[g * cout_g:(g + 1) * cout_g])
        # Tap-fused weight: row layout matches stack rows k*C_in + i.
        w_arr = jnp.transpose(dense, (0, 2, 1)).reshape(c_out, kSize * c_in)
        w_arr = w_arr.astype(jnp.bfloat16 if use_bf16_matmul else jnp.float32)
    b_col = bias.reshape(c_out, 1).astype(jnp.float32)

    # ---- lane-dense time axis with >= pad zero slack ------------------------
    # t_pad >= T + pad guarantees roll wrap-around only pulls zeros -> no masks.
    t_pad = pl.cdiv(T + pad, 128) * 128

    # ---- batch blocking ------------------------------------------------------
    num_tc, vmem_phys = _chip_info()
    if num_tc >= 2:
        chip_cap = 48 * 1024 * 1024        # leave headroom under v7x's 64 MiB
        budget = 16 * 1024 * 1024          # per-step double-buffered in+out
    else:
        chip_cap = 100 * 1024 * 1024       # v5e/v6e: 128 MiB physical VMEM
        budget = 40 * 1024 * 1024

    bytes_per_sample = 4 * (c_in + c_out) * t_pad             # f32 in + out
    if block_batch is None:
        cap = max(1, budget // max(1, 2 * bytes_per_sample))  # 2x: double buf
        if num_tc >= 2:
            block_batch = max(1, min(cap, pl.cdiv(B, 2)))     # keep grid >= 2
        else:
            block_batch = max(1, min(cap, B))                 # grid of 1 is fine
    b_pad = pl.cdiv(B, block_batch) * block_batch

    xp = x.astype(jnp.float32)
    if b_pad != B or t_pad != T:
        xp = jnp.pad(xp, ((0, b_pad - B), (0, 0), (0, t_pad - T)))

    stack_dtype = jnp.bfloat16 if use_bf16_matmul else jnp.float32
    stack_bytes = 0 if depthwise else kSize * c_in * t_pad * jnp.dtype(stack_dtype).itemsize
    fixed_bytes = w_arr.size * w_arr.dtype.itemsize + b_col.size * 4 + stack_bytes
    step_bytes = block_batch * bytes_per_sample
    vmem_limit = int(min(chip_cap,
                         max(32 * 1024 * 1024,
                             2 * step_bytes + fixed_bytes + 2 * 1024 * 1024)))

    if depthwise:
        kernel = functools.partial(_dilated_conv_depthwise_kernel,
                                   ksize=kSize, dil=d, pad=pad)
        scratch_shapes = []
    else:
        kernel = functools.partial(_dilated_conv_matmul_kernel,
                                   ksize=kSize, dil=d, pad=pad, c_in=c_in)
        scratch_shapes = [pltpu.VMEM((kSize * c_in, t_pad), stack_dtype)]

    out = pl.pallas_call(
        kernel,
        out_shape=jax.ShapeDtypeStruct((b_pad, c_out, t_pad), jnp.float32),
        grid_spec=pltpu.PrefetchScalarGridSpec(
            num_scalar_prefetch=0,
            grid=(b_pad // block_batch,),
            in_specs=[
                pl.BlockSpec((block_batch, c_in, t_pad), lambda i: (i, 0, 0)),
                pl.BlockSpec(w_arr.shape, lambda i: (0,) * w_arr.ndim),
                pl.BlockSpec((c_out, 1), lambda i: (0, 0)),
            ],
            out_specs=pl.BlockSpec((block_batch, c_out, t_pad),
                                   lambda i: (i, 0, 0)),
            scratch_shapes=scratch_shapes,
        ),
        compiler_params=pltpu.CompilerParams(
            dimension_semantics=("parallel",),
            vmem_limit_bytes=vmem_limit),
    )(xp, w_arr, b_col)

    out = out[:B, :, :T]
    if stride > 1:
        # With "same" odd-kernel padding, the strided conv equals the stride-1
        # output subsampled every `stride` steps.
        out = out[:, :, ::stride]
    return out


# --------------------------------------------------------------------------
# Pure-JAX reference (mirrors PyTorch Conv1d semantics)
# --------------------------------------------------------------------------
def reference(x, weight, bias, *, kSize, stride=1, d=1, groups=1):
    pad = (kSize - 1) // 2 * d
    out = jax.lax.conv_general_dilated(
        x, weight,
        window_strides=(stride,),
        padding=[(pad, pad)],
        rhs_dilation=(d,),
        dimension_numbers=("NCH", "OIH", "NCH"),
        feature_group_count=groups,
        precision=jax.lax.Precision.HIGHEST)
    return out + bias.reshape(1, -1, 1)


if __name__ == "__main__":
    key = jax.random.PRNGKey(0)

    # (name, B, nIn, nOut, T, kSize, stride, d, groups)
    configs = [
        ("dilated",         2, 16, 32, 128, 5, 1, 2, 1),
        ("depthwise",       2, 32, 32, 100, 5, 1, 1, 32),
        ("grouped_strided", 3,  8,  8,  64, 3, 2, 1, 4),
    ]
    for name, B, ci, co, T, k, s, d, g in configs:
        key, kx, kw, kb = jax.random.split(key, 4)
        x = jax.random.normal(kx, (B, ci, T), jnp.float32)
        w = 0.2 * jax.random.normal(kw, (co, ci // g, k), jnp.float32)
        b = 0.1 * jax.random.normal(kb, (co,), jnp.float32)

        out = jax.block_until_ready(
            dilated_conv(x, w, b, kSize=k, stride=s, d=d, groups=g))
        ref = jax.block_until_ready(
            reference(x, w, b, kSize=k, stride=s, d=d, groups=g))

        assert out.shape == ref.shape, (name, out.shape, ref.shape)
        err = float(jnp.max(jnp.abs(out - ref)))
        assert jnp.allclose(out, ref, rtol=1e-4, atol=1e-4), \
            f"{name}: max abs err {err}"

    print("KERNEL_OK")
</pallas_src>

<mosaic_0001>
module attributes {stable_mosaic.version = 11 : i64} {
  func.func @_dilated_conv_matmul_kernel(%arg0: i32, %arg1: memref<2x16x256xf32, #tpu.memory_space<vmem>>, %arg2: memref<32x80xf32, #tpu.memory_space<vmem>>, %arg3: memref<32x1xf32, #tpu.memory_space<vmem>>, %arg4: memref<2x32x256xf32, #tpu.memory_space<vmem>>, %arg5: memref<80x256xf32, #tpu.memory_space<vmem>>) attributes {dimension_semantics = [#tpu.dimension_semantics<parallel>], iteration_bounds = array<i64: 1>, scalar_prefetch = 0 : i64, scratch_operands = 1 : i64, tpu.core_type = #tpu.core_type<tc>, window_params = [{transform_indices = @transform_0, window_bounds = array<i64: 2, 16, 256>}, {pipeline_mode = #tpu.pipeline_mode<synchronous>, transform_indices = @transform_1, window_bounds = array<i64: 32, 80>}, {pipeline_mode = #tpu.pipeline_mode<synchronous>, transform_indices = @transform_2, window_bounds = array<i64: 32, 1>}, {transform_indices = @transform_3, window_bounds = array<i64: 2, 32, 256>}]} {
    %c0 = arith.constant 0 : index
    %c0_0 = arith.constant 0 : index
    %0 = vector.load %arg2[%c0, %c0_0] : memref<32x80xf32, #tpu.memory_space<vmem>>, vector<32x80xf32>
    %c0_1 = arith.constant 0 : index
    %c0_2 = arith.constant 0 : index
    %1 = vector.load %arg3[%c0_1, %c0_2] : memref<32x1xf32, #tpu.memory_space<vmem>>, vector<32x1xf32>
    %c0_i32 = arith.constant 0 : i32
    %c2_i32 = arith.constant 2 : i32
    %2 = arith.addi %c0_i32, %c2_i32 : i32
    %c1_i32 = arith.constant 1 : i32
    scf.for %arg6 = %c0_i32 to %2 step %c1_i32  : i32 {
      %3 = arith.index_cast %arg6 : i32 to index
      %c0_4 = arith.constant 0 : index
      %c0_5 = arith.constant 0 : index
      %4 = vector.load %arg1[%3, %c0_4, %c0_5] : memref<2x16x256xf32, #tpu.memory_space<vmem>>, vector<1x16x256xf32>
      %5 = vector.shape_cast %4 : vector<1x16x256xf32> to vector<16x256xf32>
      %c4_i32 = arith.constant 4 : i32
      %6 = tpu.dynamic_rotate %5 by %c4_i32 dim 1 : vector<16x256xf32>, i32 -> vector<16x256xf32>
      %c0_6 = arith.constant 0 : index
      %c0_7 = arith.constant 0 : index
      %7 = vector.load %arg5[%c0_6, %c0_7] : memref<80x256xf32, #tpu.memory_space<vmem>>, vector<16x256xf32>
      tpu.vector_store %arg5[%c0_6, %c0_7], %6 {strides = array<i32>} : memref<80x256xf32, #tpu.memory_space<vmem>>, vector<16x256xf32>,
      %c2_i32_8 = arith.constant 2 : i32
      %8 = tpu.dynamic_rotate %5 by %c2_i32_8 dim 1 : vector<16x256xf32>, i32 -> vector<16x256xf32>
      %c16 = arith.constant 16 : index
      %c0_9 = arith.constant 0 : index
      %9 = vector.load %arg5[%c16, %c0_9] : memref<80x256xf32, #tpu.memory_space<vmem>>, vector<16x256xf32>
      tpu.vector_store %arg5[%c16, %c0_9], %8 {strides = array<i32>} : memref<80x256xf32, #tpu.memory_space<vmem>>, vector<16x256xf32>,
      %c32 = arith.constant 32 : index
      %c0_10 = arith.constant 0 : index
      %10 = vector.load %arg5[%c32, %c0_10] : memref<80x256xf32, #tpu.memory_space<vmem>>, vector<16x256xf32>
      tpu.vector_store %arg5[%c32, %c0_10], %5 {strides = array<i32>} : memref<80x256xf32, #tpu.memory_space<vmem>>, vector<16x256xf32>,
      %c254_i32 = arith.constant 254 : i32
      %11 = tpu.dynamic_rotate %5 by %c254_i32 dim 1 : vector<16x256xf32>, i32 -> vector<16x256xf32>
      %c48 = arith.constant 48 : index
      %c0_11 = arith.constant 0 : index
      %12 = vector.load %arg5[%c48, %c0_11] : memref<80x256xf32, #tpu.memory_space<vmem>>, vector<16x256xf32>
      tpu.vector_store %arg5[%c48, %c0_11], %11 {strides = array<i32>} : memref<80x256xf32, #tpu.memory_space<vmem>>, vector<16x256xf32>,
      %c252_i32 = arith.constant 252 : i32
      %13 = tpu.dynamic_rotate %5 by %c252_i32 dim 1 : vector<16x256xf32>, i32 -> vector<16x256xf32>
      %c64 = arith.constant 64 : index
      %c0_12 = arith.constant 0 : index
      %14 = vector.load %arg5[%c64, %c0_12] : memref<80x256xf32, #tpu.memory_space<vmem>>, vector<16x256xf32>
      tpu.vector_store %arg5[%c64, %c0_12], %13 {strides = array<i32>} : memref<80x256xf32, #tpu.memory_space<vmem>>, vector<16x256xf32>,
      %c0_13 = arith.constant 0 : index
      %c0_14 = arith.constant 0 : index
      %15 = vector.load %arg5[%c0_13, %c0_14] : memref<80x256xf32, #tpu.memory_space<vmem>>, vector<80x256xf32>
      %cst = arith.constant dense<0.000000e+00> : vector<32x256xf32>
      %16 = tpu.matmul %0, %15, %cst {dimension_numbers = #tpu.dot_dimension_numbers<[1], [0], [0], [1], [0, 0, 1, 1], [], []>} : vector<32x80xf32>, vector<80x256xf32>, vector<32x256xf32> -> vector<32x256xf32>
      %17 = vector.broadcast %1 : vector<32x1xf32> to vector<32x256xf32>
      %18 = arith.addf %16, %17 : vector<32x256xf32>
      %19 = arith.index_cast %arg6 : i32 to index
      %c0_15 = arith.constant 0 : index
      %c0_16 = arith.constant 0 : index
      %20 = vector.load %arg4[%19, %c0_15, %c0_16] : memref<2x32x256xf32, #tpu.memory_space<vmem>>, vector<1x32x256xf32>
      %21 = vector.shape_cast %20 : vector<1x32x256xf32> to vector<32x256xf32>
      %22 = vector.shape_cast %18 : vector<32x256xf32> to vector<1x32x256xf32>
      tpu.vector_store %arg4[%19, %c0_15, %c0_16], %22 {strides = array<i32>} : memref<2x32x256xf32, #tpu.memory_space<vmem>>, vector<1x32x256xf32>,
    }
    %c2_i32_3 = arith.constant 2 : i32
    return
  }
  func.func @transform_0(%arg0: i32) -> (i32, i32, i32) {
    %c0_i32 = arith.constant 0 : i32
    %c0_i32_0 = arith.constant 0 : i32
    %c0_i32_1 = arith.constant 0 : i32
    return %arg0, %c0_i32, %c0_i32_0 : i32, i32, i32
  }
  func.func @transform_1(%arg0: i32) -> (i32, i32) {
    %c0_i32 = arith.constant 0 : i32
    %c0_i32_0 = arith.constant 0 : i32
    %c0_i32_1 = arith.constant 0 : i32
    return %c0_i32, %c0_i32_0 : i32, i32
  }
  func.func @transform_2(%arg0: i32) -> (i32, i32) {
    %c0_i32 = arith.constant 0 : i32
    %c0_i32_0 = arith.constant 0 : i32
    %c0_i32_1 = arith.constant 0 : i32
    return %c0_i32, %c0_i32_0 : i32, i32
  }
  func.func @transform_3(%arg0: i32) -> (i32, i32, i32) {
    %c0_i32 = arith.constant 0 : i32
    %c0_i32_0 = arith.constant 0 : i32
    %c0_i32_1 = arith.constant 0 : i32
    return %arg0, %c0_i32, %c0_i32_0 : i32, i32, i32
  }
}

</mosaic_0001>

<bundles_post_ra>
// kernel: tpu_custom_call.1
= control target key start
LH: loop header
LB: loop body
LE: loop exit
PB: predicated region body
PF: predicated region fallthrough
CT: control target
= control target key end

     0   :  { %8 = vsyncpa [#allocation4], 0  ;;  %s619_s0 = inlined_call_operand.hbm [shape: f32[2,16,256], index: 0, kind: input, shape index: {}]   ;;  %s620_s1 = inlined_call_operand.vmem [shape: f32[32,80], index: 1, kind: input, shape index: {}]   ;;  %s621_s2 = inlined_call_operand.vmem [shape: f32[32,1], index: 2, kind: input, shape index: {}]   ;;  %s622_s3 = inlined_call_operand.hbm [shape: f32[2,32,256], index: 3, kind: output, shape index: {}]  }
   0x1   :  { %9 = vsyncpa [#allocation5], 0  ;;  %s459_s12 = smov [#allocation3]   ;;  %s403_s16 = scalar_lea.hbm %s619_s0, 1024 }
   0x2   :  { %s15_s13 = sshll.u32 %s459_s12, 4  ;;  %p404_p0 = scmp.ne.s32.totalorder %s619_s0, %s403_s16  ;;  %s16_s13 = int_to_ptr.vmem [resolvable:$true] %s15_s13 }
   0x3   :  { %p407_p1 = scmp.lt.u32.totalorder %s403_s16, %s619_s0 }
   0x5   :  { %p409_p2 = pnand %p407_p1, %p404_p0 }
   0x7   :  { %412 = shalt.err (!%p409_p2)
}
   0x8   :  { %s413_s21 = scalar_lea.vmem %s16_s13, 1024  ;;  %p418_p4 = scmp.lt.s32.totalorder %s16_s13, %s16_s13 }
   0x9   :  { %p414_p3 = scmp.ne.s32.totalorder %s16_s13, %s413_s21  ;;  %p419_p5 = scmp.lt.s32.totalorder %s413_s21, %s413_s21 }
   0xb   :  { %p420_p6 = por %p419_p5, %p418_p4 }
   0xd   :  { %p421_p7 = pnand %p420_p6, %p414_p3 }
   0xf   :  { %424 = shalt.err (!%p421_p7)
}
  0x10   :  { %s460_s22 = smov 256   ;;  %s461_s23 = smov 16  }
  0x11   :  { %21 = dma.hbm_to_vmem [thread:$0]  %s619_s0, 1024, %s16_s13, [#allocation4], %s460_s22, %s460_s22, %s461_s23  }
  0x12   :  { %451 = dma.done.wait [#allocation4], 1024  }
  0x13   :  { %452 = vsyncadd [#allocation4], 4294966272  ;;  %v507_v0 = vld [vmem:[%s620_s1] sm:$0xff]  ;;  %v512_v1 = vld [vmem:[%s620_s1 + $0x8] sm:$0xff] }
  0x14   :  { %v517_v2 = vld [vmem:[%s620_s1 + $0x10] sm:$0xff]  ;;  %v522_v3 = vld [vmem:[%s620_s1 + $0x18] sm:$0xff]  ;;  %v527_v4 = vld [vmem:[%s621_s2] sm:$0xff]  ;;  %s544_s1 = smov 0  }
  0x15   :  { %v532_v5 = vld [vmem:[%s621_s2 + $0x8] sm:$0xff]  ;;  %v537_v6 = vld [vmem:[%s621_s2 + $0x10] sm:$0xff]  ;;  %v542_v7 = vld [vmem:[%s621_s2 + $0x18] sm:$0xff] }
  0x16 LB: > { %s311_s14 = sshll.u32 %s457_s1, 5  ;;  %s462_s16 = smov 2   ;;  %v466_v16 = vmov 0.0   ;;  %v467_v17 = vmov 0   ;;  %v58_v18 = vlaneseq  ;;  %vm164_vm4 = vcmask 654336   ;;  %s457_s1 = sphi %s544_s1, %s42_s1  }
  0x17   : > { %s45_s15 = scalar_lea.vmem [#allocation3], %s311_s14  ;;  %s463_s17 = smov 4   ;;  %241 = vmatprep.mubr.f32.mxu0 %v466_v16  ;;  %253 = vmatprep.mubr.f32.mxu1 %v466_v16 }
  0x18   : > { %v46_v8 = vld [vmem:[%s45_s15] sm:$0xff]  ;;  %v48_v9 = vld [vmem:[%s45_s15 + $0x10] sm:$0xff]  ;;  %v47_v10 = vld [vmem:[%s45_s15 + $0x8] sm:$0xff]  ;;  %s464_s2 = smov 126   ;;  %s465_s18 = smov 124   ;;  %402 = vset.pattern.permute.xlu1 %v467_v17  ;;  %401 = vset.pattern.permute.xlu0 %v467_v17  ;;  %v560_v19 = vand.u32 127, %v58_v18 }
  0x19   : > { %v371_v11 = vpack.i.bf16 %v48_v9, %v46_v8  ;;  %v49_v12 = vld [vmem:[%s45_s15 + $0x18] sm:$0xff]  ;;  %v552_v15 = vpack.c.bf16 %v48_v9, %v46_v8  ;;  %s312_s19 = sshll.u32 %s457_s1, 6  ;;  %s42_s1 = sadd.s32 1, %s457_s1  }
  0x1a   : > { %v376_v13 = vpack.i.bf16 %v49_v12, %v47_v10  ;;  %v550_v14 = vpack.c.bf16 %v49_v12, %v47_v10  ;;  %vm60_vm0 = vcmp.lt.s32.totalorder %v560_v19, 4  ;;  %vm77_vm1 = vcmp.lt.s32.totalorder %v560_v19, 2  ;;  %s268_s20 = scalar_lea.vmem [#allocation6], %s312_s19  ;;  %p39_p8 = scmp.ge.s32.totalorder %s42_s1, 2  }
  0x1b   : > { %372 = vrot.lane.b32.xlu1 %v371_v11, %s462_s16  ;;  %362 = vrot.lane.b32.xlu0 %v371_v11, %s463_s17  ;;  %vm98_vm2 = vcmp.lt.s32.totalorder %v560_v19, 126  ;;  %vm115_vm3 = vcmp.lt.s32.totalorder %v560_v19, 124  ;;  %s468_s21 = smov (%p39_p8), [#allocation6]  }
  0x1c   :  { %s282_s24 = sshll.u32 (%p39_p8), %s468_s21, 4  ;;  %s283_s24 = int_to_ptr.vmem [resolvable:$true] %s282_s24 }
  0x1d   :  { %s425_s25 = scalar_lea.vmem (%p39_p8), %s283_s24, 2048  ;;  %p430_p10 = scmp.lt.s32.totalorder (%p39_p8), %s283_s24, %s283_s24 }
  0x1e   :  { %p426_p9 = scmp.ne.s32.totalorder (%p39_p8), %s283_s24, %s425_s25  ;;  %p431_p11 = scmp.lt.s32.totalorder (%p39_p8), %s425_s25, %s425_s25 }
  0x1f   : > { %377 = vrot.lane.b32.xlu1 %v376_v13, %s462_s16  ;;  %367 = vrot.lane.b32.xlu0 %v376_v13, %s463_s17 }
  0x20   :  { %p432_p12 = por (%p39_p8), %p431_p11, %p430_p10 }
  0x22   :  { %p433_p13 = pnand (%p39_p8), %p432_p12, %p426_p9 }
  0x23   : > { %387 = vrot.lane.b32.xlu1 %v376_v13, %s464_s2  ;;  %382 = vrot.lane.b32.xlu0 %v371_v11, %s464_s2 }
  0x27   : > { %397 = vrot.lane.b32.xlu1 %v376_v13, %s465_s18  ;;  %392 = vrot.lane.b32.xlu0 %v371_v11, %s465_s18 }
  0x2b   : > { %151 = vperm.xlu1 %402, %v532_v5   ;;  %146 = vperm.xlu0 %401, %v527_v4  }
  0x2f   : > { %156 = vperm.xlu1 %402, %v537_v6   ;;  %161 = vperm.xlu0 %401, %v542_v7  }
  0x8d   : > { %v373_v20 = vpop.permute.xlu1 %372  ;;  %v363_v21 = vpop.permute.xlu0 %362 }
  0x8e   : > { %v375_v22 = vunpack.i.h.bf16 %v373_v20  ;;  %v374_v23 = vunpack.i.l.bf16 %v373_v20  ;;  %v365_v24 = vunpack.i.h.bf16 %v363_v21  ;;  %v364_v25 = vunpack.i.l.bf16 %v363_v21 }
  0x91   : > { %v378_v26 = vpop.permute.xlu1 %377  ;;  %v368_v27 = vpop.permute.xlu0 %367 }
  0x92   : > { %v380_v28 = vunpack.i.h.bf16 %v378_v26  ;;  %v379_v29 = vunpack.i.l.bf16 %v378_v26  ;;  %v370_v30 = vunpack.i.h.bf16 %v368_v27  ;;  %v369_v31 = vunpack.i.l.bf16 %v368_v27 }
  0x94   : > { %v61_v32 = vsel %vm60_vm0, %v364_v25, %v369_v31  ;;  %v62_v33 = vsel %vm60_vm0, %v365_v24, %v370_v30  ;;  %v63_v34 = vsel %vm60_vm0, %v369_v31, %v364_v25  ;;  %v64_v35 = vsel %vm60_vm0, %v370_v30, %v365_v24 }
  0x95   : > { %v313_v36 = vpack.c.bf16 %v62_v33, %v61_v32  ;;  %v315_v37 = vpack.c.bf16 %v64_v35, %v63_v34  ;;  %v78_v38 = vsel %vm77_vm1, %v374_v23, %v379_v29  ;;  %v79_v39 = vsel %vm77_vm1, %v375_v22, %v380_v28  ;;  %v388_v40 = vpop.permute.xlu1 %387  ;;  %v383_v41 = vpop.permute.xlu0 %382 }
  0x96   : > { %v80_v42 = vsel %vm77_vm1, %v379_v29, %v374_v23  ;;  %v81_v43 = vsel %vm77_vm1, %v380_v28, %v375_v22  ;;  %v390_v44 = vunpack.i.h.bf16 %v388_v40  ;;  %v317_v45 = vpack.c.bf16 %v79_v39, %v78_v38 }
  0x97   : > { %314 = vmatprep.subr.bf16.mxu0 %v313_v36  ;;  %333 = vmatprep.subr.bf16.mxu1 %v313_v36  ;;  %v389_v46 = vunpack.i.l.bf16 %v388_v40  ;;  %v385_v47 = vunpack.i.h.bf16 %v383_v41  ;;  %v384_v48 = vunpack.i.l.bf16 %v383_v41  ;;  %v319_v49 = vpack.c.bf16 %v81_v43, %v80_v42 }
  0x98   : > { %316 = vmatpush1.bf16.msra.mxu0 %v315_v37  ;;  %338 = vmatpush1.bf16.msra.mxu1 %v315_v37 }
  0x99   : > { %318 = vmatprep.subr.bf16.mxu0 %v317_v45  ;;  %334 = vmatprep.subr.bf16.mxu1 %v317_v45  ;;  %v398_v50 = vpop.permute.xlu1 %397  ;;  %v393_v51 = vpop.permute.xlu0 %392  ;;  %v101_v52 = vsel %vm98_vm2, %v389_v46, %v384_v48  ;;  %v102_v53 = vsel %vm98_vm2, %v390_v44, %v385_v47  ;;  %v99_v59 = vsel %vm98_vm2, %v384_v48, %v389_v46 }
  0x9a   : > { %v400_v54 = vunpack.i.h.bf16 %v398_v50  ;;  %v399_v55 = vunpack.i.l.bf16 %v398_v50  ;;  %v395_v56 = vunpack.i.h.bf16 %v393_v51  ;;  %v394_v57 = vunpack.i.l.bf16 %v393_v51 }
  0x9b   : > { %v325_v58 = vpack.c.bf16 %v102_v53, %v101_v52  ;;  %v100_v60 = vsel %vm98_vm2, %v385_v47, %v390_v44 }
  0x9c   : > { %320 = vmatpush1.bf16.msra.mxu0 %v319_v49  ;;  %339 = vmatpush1.bf16.msra.mxu1 %v319_v49  ;;  %v118_v61 = vsel %vm115_vm3, %v399_v55, %v394_v57  ;;  %v119_v62 = vsel %vm115_vm3, %v400_v54, %v395_v56  ;;  %v327_v63 = vpack.c.bf16 %v100_v60, %v99_v59 }
  0x9d   : > { %322 = vmatprep.subr.bf16.mxu0 %v550_v14  ;;  %335 = vmatprep.subr.bf16.mxu1 %v550_v14  ;;  %v329_v8 = vpack.c.bf16 %v119_v62, %v118_v61  ;;  %v116_v9 = vsel %vm115_vm3, %v394_v57, %v399_v55  ;;  %v117_v10 = vsel %vm115_vm3, %v395_v56, %v400_v54 }
  0x9e   : > { %v331_v11 = vpack.c.bf16 %v117_v10, %v116_v9 }
  0xa0   : > { %324 = vmatpush1.bf16.msra.mxu0 %v552_v15  ;;  %340 = vmatpush1.bf16.msra.mxu1 %v552_v15 }
  0xa1   : > { %326 = vmatprep.subr.bf16.mxu0 %v325_v58  ;;  %336 = vmatprep.subr.bf16.mxu1 %v325_v58 }
  0xa4   : > { %328 = vmatpush1.bf16.msra.mxu0 %v327_v63  ;;  %341 = vmatpush1.bf16.msra.mxu1 %v327_v63 }
  0xa5   : > { %330 = vmatprep.subr.bf16.mxu0 %v329_v8  ;;  %337 = vmatprep.subr.bf16.mxu1 %v329_v8 }
  0xa8   : > { %332 = vmatpush1.bf16.msra.mxu0 %v331_v11  ;;  %342 = vmatpush1.bf16.msra.mxu1 %v331_v11 }
  0xaa   : > { %v152_v12 = vpop.permute.xlu1 %151  ;;  %v147_v13 = vpop.permute.xlu0 %146 }
  0xab   : > { %305 = vmatmul.mubr.msk.f32.vlgmr.msra.gmra.mrb[0].mxu0 %vm164_vm4, %v507_v0  ;;  %307 = vmatmul.mubr.msk.f32.vlgmr.msra.gmra.mrb[0].mxu1 %vm164_vm4, %v517_v2 }
  0xac   : > { %247 = vmatprep.mubr.f32.mxu0 %v466_v16  ;;  %259 = vmatprep.mubr.f32.mxu1 %v466_v16 }
  0xae   : > { %v157_v14 = vpop.permute.xlu1 %156  ;;  %v162_v16 = vpop.permute.xlu0 %161 }
  0xaf   : > { %306 = vmatmul.mubr.msk.f32.gmra.mrb[2].mxu0 %vm164_vm4, %v512_v1  ;;  %308 = vmatmul.mubr.msk.f32.gmra.mrb[2].mxu1 %vm164_vm4, %v522_v3 }
 0x17e   : > { %v243_v15 = vpop.f32.mrb[0].mxu0  ;;  %v255_v17 = vpop.f32.mrb[0].mxu1 }
 0x17f   : > { %v244_v18 = vadd.f32 %v243_v15, %v147_v13  ;;  %v256_v19 = vadd.f32 %v255_v17, %v157_v14  ;;  %v245_v20 = vpop.f32.mrb[1].mxu0  ;;  %v257_v21 = vpop.f32.mrb[1].mxu1 }
 0x180   : > { %v246_v22 = vadd.f32 %v245_v20, %v147_v13  ;;  %v258_v23 = vadd.f32 %v257_v21, %v157_v14  ;;  %41 = sbr.rel (!%p39_p8) target bundleno = 22 (0x16), region = 45 }
 0x181   : > { %269 = vst [vmem:[%s268_s20] sm:$0xff] %v244_v18  ;;  %273 = vst [vmem:[%s268_s20 + $0x20] sm:$0xff] %v256_v19 }
 0x182   : > { %270 = vst [vmem:[%s268_s20 + $0x8] sm:$0xff] %v246_v22  ;;  %274 = vst [vmem:[%s268_s20 + $0x28] sm:$0xff] %v258_v23  ;;  %v249_v24 = vpop.f32.mrb[2].mxu0  ;;  %v261_v25 = vpop.f32.mrb[2].mxu1 }
 0x183   : > { %v250_v26 = vadd.f32 %v249_v24, %v152_v12  ;;  %v262_v27 = vadd.f32 %v261_v25, %v162_v16  ;;  %v251_v28 = vpop.f32.mrb[3].mxu0  ;;  %v263_v29 = vpop.f32.mrb[3].mxu1 }
 0x184   : > { %v252_v30 = vadd.f32 %v251_v28, %v152_v12  ;;  %v264_v31 = vadd.f32 %v263_v29, %v162_v16 }
 0x185   : > { %271 = vst [vmem:[%s268_s20 + $0x10] sm:$0xff] %v250_v26  ;;  %275 = vst [vmem:[%s268_s20 + $0x30] sm:$0xff] %v262_v27 }
 0x186   : > { %272 = vst [vmem:[%s268_s20 + $0x18] sm:$0xff] %v252_v30  ;;  %276 = vst [vmem:[%s268_s20 + $0x38] sm:$0xff] %v264_v31 }
 0x187   :  { %436 = shalt.err (!%p433_p13)
}
 0x188   :  { %s437_s28 = scalar_lea.hbm %s622_s3, 2048 }
 0x189   :  { %p438_p0 = scmp.ne.s32.totalorder %s622_s3, %s437_s28  ;;  %p441_p1 = scmp.lt.u32.totalorder %s437_s28, %s622_s3 }
 0x18b   :  { %p443_p2 = pnand %p441_p1, %p438_p0 }
 0x18d   :  { %446 = shalt.err (!%p443_p2)
}
 0x18e   :  { %288 = dma.vmem_to_hbm [thread:$0]  %s283_s24, 2048, %s622_s3, [#allocation5], %s460_s22, %s460_s22, %s461_s23  }
 0x18f   :  { %453 = dma.done.wait [#allocation5], 2048  }
 0x190   :  { %454 = vsyncadd [#allocation5], 4294965248 }
 0x191   :  { %292 = vsyncpa [#allocation4], 1 }
 0x192   :  { %293 = vsyncpa [#allocation5], 1 }

</bundles_post_ra>
